<compile_context>
chip_gen: v7x
topology: tpu7x:2x2x1
jax: 0.10.0
libtpu: 0.0.40
codegen_flags: <defaults>
</compile_context>

<pallas_src>
import math

import jax
import jax.numpy as jnp
from jax.experimental import pallas as pl
from jax.experimental.pallas import tpu as pltpu


def make_proxy_anchor_kernel(nb_classes, mrg, alpha, tile_c, matmul_dtype):
    def kernel(xn_ref, t_ref, pT_ref, out_ref):
        c = pl.program_id(0)

        xn = xn_ref[...].astype(matmul_dtype)        # [n, d]  (pre-normalized)
        pT = pT_ref[...].astype(matmul_dtype)        # [d, tile_c] (pre-normalized, transposed)
        n = xn.shape[0]

        # Canonical MN matmul: cos = l2(X) @ l2(P)^T tile, straight to the MXU.
        cos = jax.lax.dot_general(
            xn, pT, (((1,), (0,)), ((), ())),
            preferred_element_type=jnp.float32)      # [n, tile_c]

        labels = t_ref[...]                          # [n, 1] int32
        class_ids = (jax.lax.broadcasted_iota(jnp.int32, (n, tile_c), 1)
                     + c * tile_c)                   # global class ids
        pos_mask = class_ids == labels               # bool [n, tile_c]
        real_cls = class_ids < nb_classes            # mask out the C padding
        neg_mask = jnp.logical_and(real_cls, jnp.logical_not(pos_mask))

        # Negatives: single full-size exp per tile.
        neg_exp = jnp.exp(alpha * (cos + mrg))
        n_sim_sum = jnp.sum(jnp.where(neg_mask, neg_exp, 0.0), axis=0)          # [tile_c]

        # Positives: each row has at most one positive class in this tile, so
        # reduce the row's positive cosine first and exp only an [n,1] vector.
        pos_cos = jnp.sum(jnp.where(pos_mask, cos, 0.0), axis=1, keepdims=True)  # [n, 1]
        pos_row_exp = jnp.exp(-alpha * (pos_cos - mrg))                          # [n, 1]
        p_sim_sum = jnp.sum(jnp.where(pos_mask, pos_row_exp, 0.0), axis=0)       # [tile_c]
        pos_count = jnp.sum(pos_mask.astype(jnp.float32), axis=0)                # [tile_c]

        # Per-tile, per-class partials in a lane-dense (1, 8, tile_c) block:
        #   sublane 0: log1p(P_sim_sum), sublane 1: log1p(N_sim_sum),
        #   sublane 2: has-positive flag, sublanes 3..7: zero.
        # Padded classes contribute log1p(0) = 0 and no valid-proxy count.
        sub = jax.lax.broadcasted_iota(jnp.int32, (1, 8, tile_c), 1)
        log_p = jnp.log1p(p_sim_sum)[None, None, :]
        log_n = jnp.log1p(n_sim_sum)[None, None, :]
        valid = (pos_count > 0.0).astype(jnp.float32)[None, None, :]
        out_ref[...] = jnp.where(sub == 0, log_p,
                        jnp.where(sub == 1, log_n,
                         jnp.where(sub == 2, valid, 0.0)))

    return kernel


def proxy_anchor_loss(X, T, proxies, *, mrg=0.1, alpha=32.0, tile_c=256,
                      matmul_dtype=jnp.float32):
    """X: [n, d] f32, T: [n] int labels, proxies: [C, d] f32 -> scalar f32 loss.

    matmul_dtype=jnp.bfloat16 feeds the MXU at full rate on v6e/v7x, but
    alpha=32 amplifies the ~1e-3 cos error; keep f32 for tight reference match.
    """
    n, d = X.shape
    C, d2 = proxies.shape
    assert d == d2

    # Class tile: lane-aligned (multiple of 128); default 256 to amortize the
    # ~0.35 us per-grid-step overhead and feed the 256-wide MXU on v6e/v7x.
    tile_c = max(128, ((min(tile_c, C) + 127) // 128) * 128)
    num_tiles = -(-C // tile_c)            # cdiv
    c_pad = num_tiles * tile_c

    def l2n(v):
        return v / jnp.sqrt(jnp.sum(v * v, axis=1, keepdims=True) + 1e-12)

    # Normalize X once and proxies once (plus transpose) in the wrapper: the
    # kernel sees ready-to-matmul operands and holds only one logical X copy.
    xn = l2n(X.astype(jnp.float32))                  # [n, d]
    pT = l2n(proxies.astype(jnp.float32)).T          # [d, C]
    if c_pad != C:
        pT = jnp.pad(pT, ((0, 0), (0, c_pad - C)))   # zero columns, masked in-kernel
    t2 = T.reshape(n, 1).astype(jnp.int32)

    kernel = make_proxy_anchor_kernel(C, float(mrg), float(alpha), tile_c,
                                      matmul_dtype)

    # VMEM budget from actual buffers (double-buffered X, labels, proxy tile,
    # output block, plus headroom for the [n, tile_c] intermediates); capped so
    # it stays safe on v7x's 64 MiB VMEM (v5e/v6e could go toward ~100 MiB).
    vmem_bytes = (2 * n * d * 4 + 2 * n * 4
                  + 2 * d * tile_c * 4 + 2 * 8 * tile_c * 4
                  + 8 * n * tile_c * 4 + (1 << 20))
    vmem_limit = int(min(max(vmem_bytes, 32 * 1024 * 1024), 56 * 1024 * 1024))

    res = pl.pallas_call(
        kernel,
        out_shape=jax.ShapeDtypeStruct((num_tiles, 8, tile_c), jnp.float32),
        grid=(num_tiles,),
        in_specs=[
            pl.BlockSpec((n, d), lambda c: (0, 0)),          # Xn (resident)
            pl.BlockSpec((n, 1), lambda c: (0, 0)),          # labels (resident)
            pl.BlockSpec((d, tile_c), lambda c: (0, c)),     # proxy^T tile (streamed)
        ],
        out_specs=pl.BlockSpec((1, 8, tile_c), lambda c: (c, 0, 0)),
        compiler_params=pltpu.CompilerParams(
            # No cross-tile state -> safe to shard across v7x's two TensorCores.
            dimension_semantics=("parallel",),
            vmem_limit_bytes=vmem_limit,
        ),
    )(xn, t2, pT)

    # Tiny final reduction / divide in the wrapper.
    sum_log_p = jnp.sum(res[:, 0, :])
    sum_log_n = jnp.sum(res[:, 1, :])
    num_valid = jnp.sum(res[:, 2, :])
    return sum_log_p / num_valid + sum_log_n / float(C)


def reference_proxy_anchor(X, T, proxies, *, mrg=0.1, alpha=32.0):
    """Pure-JAX mirror of the PyTorch forward (for validation)."""
    def l2n(x):
        return x / jnp.sqrt(jnp.sum(x * x, axis=1, keepdims=True) + 1e-12)

    C = proxies.shape[0]
    cos = l2n(X) @ l2n(proxies).T
    p_one_hot = jax.nn.one_hot(T, C, dtype=jnp.float32)
    pos_exp = jnp.exp(-alpha * (cos - mrg))
    neg_exp = jnp.exp(alpha * (cos + mrg))
    p_sim = jnp.sum(jnp.where(p_one_hot == 1, pos_exp, 0.0), axis=0)
    n_sim = jnp.sum(jnp.where(p_one_hot == 0, neg_exp, 0.0), axis=0)
    num_valid = jnp.sum((jnp.sum(p_one_hot, axis=0) != 0).astype(jnp.float32))
    pos_term = jnp.sum(jnp.log1p(p_sim)) / num_valid
    neg_term = jnp.sum(jnp.log1p(n_sim)) / C
    return pos_term + neg_term


if __name__ == "__main__":
    key = jax.random.PRNGKey(0)
    k_prox, k_x, k_t = jax.random.split(key, 3)

    # Small shapes, chosen so the C grid exercises multiple lane-aligned tiles
    # plus class padding (tile_c=128 -> 2 tiles for C=200, padded to 256).
    nb_classes = 200
    sz_embed = 32
    n = 16

    # nn.init.kaiming_normal_(mode='fan_out') on [C, d]: std = sqrt(2 / C).
    std = math.sqrt(2.0 / nb_classes)
    proxies = std * jax.random.normal(k_prox, (nb_classes, sz_embed), dtype=jnp.float32)

    X = jax.random.normal(k_x, (n, sz_embed), dtype=jnp.float32)
    T = jax.random.randint(k_t, (n,), 0, nb_classes, dtype=jnp.int32)

    loss = proxy_anchor_loss(X, T, proxies, mrg=0.1, alpha=32.0, tile_c=128)
    loss = jax.block_until_ready(loss)

    ref = reference_proxy_anchor(X, T, proxies, mrg=0.1, alpha=32.0)
    assert jnp.allclose(loss, ref, rtol=1e-4, atol=1e-5), (loss, ref)

    print("KERNEL_OK")
</pallas_src>

<mosaic_0001>
module attributes {stable_mosaic.version = 11 : i64} {
  func.func @kernel(%arg0: i32, %arg1: memref<16x32xf32, #tpu.memory_space<vmem>>, %arg2: memref<16x1xi32, #tpu.memory_space<vmem>>, %arg3: memref<32x128xf32, #tpu.memory_space<vmem>>, %arg4: memref<1x8x128xf32, #tpu.memory_space<vmem>>) attributes {dimension_semantics = [#tpu.dimension_semantics<parallel>], iteration_bounds = array<i64: 2>, scalar_prefetch = 0 : i64, scratch_operands = 0 : i64, tpu.core_type = #tpu.core_type<tc>, window_params = [{pipeline_mode = #tpu.pipeline_mode<synchronous>, transform_indices = @transform_0, window_bounds = array<i64: 16, 32>}, {pipeline_mode = #tpu.pipeline_mode<synchronous>, transform_indices = @transform_1, window_bounds = array<i64: 16, 1>}, {transform_indices = @transform_2, window_bounds = array<i64: 32, 128>}, {transform_indices = @transform_3, window_bounds = array<i64: 1, 8, 128>}]} {
    %c0 = arith.constant 0 : index
    %c0_0 = arith.constant 0 : index
    %0 = vector.load %arg1[%c0, %c0_0] : memref<16x32xf32, #tpu.memory_space<vmem>>, vector<16x32xf32>
    %c0_1 = arith.constant 0 : index
    %c0_2 = arith.constant 0 : index
    %1 = vector.load %arg3[%c0_1, %c0_2] : memref<32x128xf32, #tpu.memory_space<vmem>>, vector<32x128xf32>
    %cst = arith.constant dense<0.000000e+00> : vector<16x128xf32>
    %2 = tpu.matmul %0, %1, %cst {dimension_numbers = #tpu.dot_dimension_numbers<[1], [0], [0], [1], [0, 0, 1, 1], [], []>} : vector<16x32xf32>, vector<32x128xf32>, vector<16x128xf32> -> vector<16x128xf32>
    %c0_3 = arith.constant 0 : index
    %c0_4 = arith.constant 0 : index
    %3 = vector.load %arg2[%c0_3, %c0_4] : memref<16x1xi32, #tpu.memory_space<vmem>>, vector<16x1xi32>
    %4 = tpu.iota {dimensions = array<i32: 1>} : vector<16x128xi32>
    %c128_i32 = arith.constant 128 : i32
    %5 = arith.muli %arg0, %c128_i32 : i32
    %6 = vector.broadcast %5 : i32 to vector<16x128xi32>
    %7 = arith.addi %4, %6 : vector<16x128xi32>
    %8 = vector.broadcast %3 : vector<16x1xi32> to vector<16x128xi32>
    %9 = arith.cmpi eq, %7, %8 : vector<16x128xi32>
    %c200_i32 = arith.constant 200 : i32
    %10 = vector.broadcast %c200_i32 : i32 to vector<16x128xi32>
    %11 = arith.cmpi slt, %7, %10 : vector<16x128xi32>
    %cst_5 = arith.constant dense<true> : vector<16x128xi1>
    %12 = arith.xori %9, %cst_5 : vector<16x128xi1>
    %13 = arith.andi %11, %12 : vector<16x128xi1>
    %cst_6 = arith.constant 1.000000e-01 : f32
    %14 = vector.broadcast %cst_6 : f32 to vector<16x128xf32>
    %15 = arith.addf %2, %14 : vector<16x128xf32>
    %cst_7 = arith.constant 3.200000e+01 : f32
    %16 = vector.broadcast %cst_7 : f32 to vector<16x128xf32>
    %17 = arith.mulf %16, %15 : vector<16x128xf32>
    %18 = math.exp %17 : vector<16x128xf32>
    %cst_8 = arith.constant 0.000000e+00 : f32
    %19 = vector.broadcast %cst_8 : f32 to vector<16x128xf32>
    %20 = arith.select %13, %18, %19 : vector<16x128xi1>, vector<16x128xf32>
    %cst_9 = arith.constant dense<0.000000e+00> : vector<128xf32>
    %21 = vector.multi_reduction <add>, %20, %cst_9 [0] : vector<16x128xf32> to vector<128xf32>
    %cst_10 = arith.constant 0.000000e+00 : f32
    %22 = vector.broadcast %cst_10 : f32 to vector<16x128xf32>
    %23 = arith.select %9, %2, %22 : vector<16x128xi1>, vector<16x128xf32>
    %cst_11 = arith.constant dense<0.000000e+00> : vector<16xf32>
    %24 = vector.multi_reduction <add>, %23, %cst_11 [1] : vector<16x128xf32> to vector<16xf32>
    %25 = vector.shape_cast %24 : vector<16xf32> to vector<16x1xf32>
    %cst_12 = arith.constant 1.000000e-01 : f32
    %26 = vector.broadcast %cst_12 : f32 to vector<16x1xf32>
    %27 = arith.subf %25, %26 : vector<16x1xf32>
    %cst_13 = arith.constant -3.200000e+01 : f32
    %28 = vector.broadcast %cst_13 : f32 to vector<16x1xf32>
    %29 = arith.mulf %28, %27 : vector<16x1xf32>
    %30 = math.exp %29 : vector<16x1xf32>
    %cst_14 = arith.constant 0.000000e+00 : f32
    %31 = vector.shape_cast %30 : vector<16x1xf32> to vector<16x1xf32>
    %32 = vector.broadcast %31 : vector<16x1xf32> to vector<16x128xf32>
    %33 = vector.broadcast %cst_14 : f32 to vector<16x128xf32>
    %34 = arith.select %9, %32, %33 : vector<16x128xi1>, vector<16x128xf32>
    %cst_15 = arith.constant dense<0.000000e+00> : vector<128xf32>
    %35 = vector.multi_reduction <add>, %34, %cst_15 [0] : vector<16x128xf32> to vector<128xf32>
    %36 = arith.extui %9 : vector<16x128xi1> to vector<16x128xi32>
    %37 = arith.sitofp %36 : vector<16x128xi32> to vector<16x128xf32>
    %cst_16 = arith.constant dense<0.000000e+00> : vector<128xf32>
    %38 = vector.multi_reduction <add>, %37, %cst_16 [0] : vector<16x128xf32> to vector<128xf32>
    %39 = tpu.iota {dimensions = array<i32: 1>} : vector<1x8x128xi32>
    %40 = math.log1p %35 : vector<128xf32>
    %41 = vector.shape_cast %40 : vector<128xf32> to vector<1x1x128xf32>
    %42 = math.log1p %21 : vector<128xf32>
    %43 = vector.shape_cast %42 : vector<128xf32> to vector<1x1x128xf32>
    %cst_17 = arith.constant 0.000000e+00 : f32
    %44 = vector.broadcast %cst_17 : f32 to vector<128xf32>
    %45 = arith.cmpf ogt, %38, %44 : vector<128xf32>
    %46 = arith.extui %45 : vector<128xi1> to vector<128xi32>
    %47 = arith.sitofp %46 : vector<128xi32> to vector<128xf32>
    %48 = vector.shape_cast %47 : vector<128xf32> to vector<1x1x128xf32>
    %c0_i32 = arith.constant 0 : i32
    %49 = vector.broadcast %c0_i32 : i32 to vector<1x8x128xi32>
    %50 = arith.cmpi eq, %39, %49 : vector<1x8x128xi32>
    %c1_i32 = arith.constant 1 : i32
    %51 = vector.broadcast %c1_i32 : i32 to vector<1x8x128xi32>
    %52 = arith.cmpi eq, %39, %51 : vector<1x8x128xi32>
    %c2_i32 = arith.constant 2 : i32
    %53 = vector.broadcast %c2_i32 : i32 to vector<1x8x128xi32>
    %54 = arith.cmpi eq, %39, %53 : vector<1x8x128xi32>
    %cst_18 = arith.constant 0.000000e+00 : f32
    %55 = vector.shape_cast %48 : vector<1x1x128xf32> to vector<1x1x128xf32>
    %56 = vector.broadcast %55 : vector<1x1x128xf32> to vector<1x8x128xf32>
    %57 = vector.broadcast %cst_18 : f32 to vector<1x8x128xf32>
    %58 = arith.select %54, %56, %57 : vector<1x8x128xi1>, vector<1x8x128xf32>
    %59 = vector.shape_cast %43 : vector<1x1x128xf32> to vector<1x1x128xf32>
    %60 = vector.broadcast %59 : vector<1x1x128xf32> to vector<1x8x128xf32>
    %61 = arith.select %52, %60, %58 : vector<1x8x128xi1>, vector<1x8x128xf32>
    %62 = vector.shape_cast %41 : vector<1x1x128xf32> to vector<1x1x128xf32>
    %63 = vector.broadcast %62 : vector<1x1x128xf32> to vector<1x8x128xf32>
    %64 = arith.select %50, %63, %61 : vector<1x8x128xi1>, vector<1x8x128xf32>
    %c0_19 = arith.constant 0 : index
    %c0_20 = arith.constant 0 : index
    %c0_21 = arith.constant 0 : index
    %65 = vector.load %arg4[%c0_19, %c0_20, %c0_21] : memref<1x8x128xf32, #tpu.memory_space<vmem>>, vector<1x8x128xf32>
    tpu.vector_store %arg4[%c0_19, %c0_20, %c0_21], %64 {strides = array<i32>} : memref<1x8x128xf32, #tpu.memory_space<vmem>>, vector<1x8x128xf32>,
    return
  }
  func.func @transform_0(%arg0: i32) -> (i32, i32) {
    %c0_i32 = arith.constant 0 : i32
    %c0_i32_0 = arith.constant 0 : i32
    %c0_i32_1 = arith.constant 0 : i32
    return %c0_i32, %c0_i32_0 : i32, i32
  }
  func.func @transform_1(%arg0: i32) -> (i32, i32) {
    %c0_i32 = arith.constant 0 : i32
    %c0_i32_0 = arith.constant 0 : i32
    %c0_i32_1 = arith.constant 0 : i32
    return %c0_i32, %c0_i32_0 : i32, i32
  }
  func.func @transform_2(%arg0: i32) -> (i32, i32) {
    %c0_i32 = arith.constant 0 : i32
    %c0_i32_0 = arith.constant 0 : i32
    return %c0_i32, %arg0 : i32, i32
  }
  func.func @transform_3(%arg0: i32) -> (i32, i32, i32) {
    %c0_i32 = arith.constant 0 : i32
    %c0_i32_0 = arith.constant 0 : i32
    %c0_i32_1 = arith.constant 0 : i32
    return %arg0, %c0_i32, %c0_i32_0 : i32, i32, i32
  }
}

</mosaic_0001>

<bundles_post_ra>
// kernel: tpu_custom_call.1
= control target key start
LH: loop header
LB: loop body
LE: loop exit
PB: predicated region body
PF: predicated region fallthrough
CT: control target
= control target key end

     0   :  { %8 = vsyncpa [#allocation3], 0  ;;  %s913_s0 = inlined_call_operand.vmem [shape: f32[16,32], index: 0, kind: input, shape index: {}]   ;;  %s914_s1 = inlined_call_operand.vmem [shape: s32[16,1], index: 1, kind: input, shape index: {}]   ;;  %s915_s2 = inlined_call_operand.hbm [shape: f32[32,256], index: 2, kind: input, shape index: {}]   ;;  %s916_s3 = inlined_call_operand.hbm [shape: f32[2,8,128], index: 3, kind: output, shape index: {}]  }
   0x1   :  { %10 = vsyncpa [#allocation3 + $0x1], 0 }
   0x2   :  { %11 = vsyncpa [#allocation4], 0 }
   0x3   :  { %13 = vsyncpa [#allocation4 + $0x1], 0  ;;  %s697_s12 = smov 0   ;;  %s699_s13 = smov 0  }
   0x4   :  { %s701_s14 = smov 0   ;;  %s703_s15 = smov 0  }
   0x5 LB: > { %s718_s16 = sadd.s32 4294967295, %s667_s15   ;;  %s461_s17 = sadd.s32 4294967294, %s667_s15   ;;  %s667_s15 = sphi %s703_s15, %s930_s15   ;;  %s663_s14 = sphi %s701_s14, %s929_s14   ;;  %s659_s13 = sphi %s699_s13, %s928_s13   ;;  %s655_s12 = sphi %s697_s12, %s927_s12  }
   0x6   : > { %s722_s18 = sadd.s32 1, %s667_s15   ;;  %s68_s19 = sadd.s32 1, %s663_s14 }
   0x7   : > { %s65_s20 = ssub.s32 %s667_s15, %s722_s18  ;;  %p75_p0 = scmp.ne.s32.totalorder %s663_s14, %s659_s13 }
   0x8   : > { %p66_p1 = scmp.eq.s32.totalorder %s65_s20, 0  ;;  %p76_p2 = scmp.eq.s32.totalorder %s667_s15, 0 }
   0x9   : > { %p81_p3 = scmp.ne.s32.totalorder %s659_s13, %s655_s12  ;;  %p82_p4 = scmp.eq.s32.totalorder %s718_s16, 0 }
   0xa   : > { %s734_s21 = scalar_select %p66_p1, %s663_s14, %s68_s19  }
   0xb   : > { %p736_p5 = por %p76_p2, %p75_p0  ;;  %p740_p6 = por %p82_p4, %p81_p3 }
   0xc   : > { %p105_p7 = scmp.eq.s32.totalorder %s718_s16, 1  ;;  %p111_p8 = scmp.eq.s32.totalorder %s461_s17, 1 }
   0xd   : > { %p518_p10 = scmp.lt.s32.totalorder %s667_s15, 2  ;;  %s137_s26 = sand.u32 1, %s663_s14  }
   0xe   : > { %p747_p11 = por %p105_p7, %p75_p0  ;;  %p751_p12 = por %p111_p8, %p81_p3 }
   0xf   : > { %s465_s27 = sshll.u32 %s667_s15, 7  ;;  %s464_s28 = sshll.u32 %s137_s26, 5 }
  0x10   : > { %s920_s24 = scalar_select %p747_p11, 1, 0 }
  0x11   : > { %s921_s25 = scalar_select %p751_p12, 1, 0 }
  0x12   : > { %s760_s4 = scalar_lea.hbm %s915_s2, %s465_s27  ;;  %s141_s5 = scalar_lea.vmem [#allocation2], %s464_s28 }
  0x13   : > { %s147_s6 = sshll.u32 %s141_s5, 4  ;;  %p764_p13 = pnand %p518_p10, %p736_p5  ;;  %s768_s6 = int_to_ptr.vmem [resolvable:$true] %s147_s6 }
  0x14   : > { %s771_s8 = scalar_lea.sflag [#allocation3], %s137_s26  ;;  %s571_s9 = scalar_lea.hbm %s760_s4, 512 }
  0x15   : > { %p572_p1 = scmp.ne.s32.totalorder %s760_s4, %s571_s9  ;;  %p573_p2 = pneg %p764_p13 }
  0x16   : > { %s576_s17 = scalar_lea.hbm %s915_s2, 1024  ;;  %p577_p5 = scmp.lt.u32.totalorder %s760_s4, %s915_s2 }
  0x17   : > { %p574_p3 = pnand %p573_p2, %p572_p1  ;;  %p578_p7 = scmp.lt.u32.totalorder %s576_s17, %s571_s9 }
  0x18   : > { %p580_p10 = scmp.lt.u32.totalorder %s571_s9, %s760_s4 }
  0x19   : > { %p575_p4 = pneg %p574_p3  ;;  %p579_p8 = por %p578_p7, %p577_p5 }
  0x1b   : > { %p581_p9 = por %p580_p10, %p579_p8 }
  0x1d   : > { %p582_p0 = pnand %p581_p9, %p575_p4 }
  0x1f   : > { %585 = shalt.err (!%p582_p0)
}
  0x20   : > { %s586_s22 = scalar_lea.vmem %s768_s6, 512  ;;  %s669_s26 = smov [#allocation2]  }
  0x21   : > { %p587_p1 = scmp.ne.s32.totalorder %s768_s6, %s586_s22  ;;  %s591_s27 = sshll.u32 %s669_s26, 4  ;;  %s592_s27 = int_to_ptr.vmem [resolvable:$false] %s591_s27 }
  0x22   : > { %s593_s28 = scalar_lea.vmem %s592_s27, 1024  ;;  %p594_p11 = scmp.lt.s32.totalorder %s768_s6, %s592_s27 }
  0x23   : > { %p589_p3 = pnand %p587_p1, %p573_p2  ;;  %p595_p5 = scmp.lt.s32.totalorder %s593_s28, %s586_s22 }
  0x25   : > { %p590_p12 = pneg %p589_p3  ;;  %p596_p7 = por %p595_p5, %p594_p11 }
  0x27   : > { %p597_p8 = pnand %p596_p7, %p590_p12 }
  0x29   : > { %600 = shalt.err (!%p597_p8)
}
  0x2a   : > { %s670_s29 = smov 256   ;;  %s671_s30 = smov 128  }
  0x2b   : > { %s672_s5 = smov 8   ;;  %p155_p9 = scmp.lt.s32.totalorder %s667_s15, 3 }
  0x2c   : > { %513 = dma.hbm_to_vmem [thread:$0]  (!%p764_p13), %s760_s4, 512, %s768_s6, %s771_s8, %s670_s29, %s671_s30, %s672_s5  }
  0x2d   : > { %p923_p0 = scmp.ge.s32.totalorder %s667_s15, 1 }
  0x2f   : > { %p156_p2 = pnand %p923_p0, %p155_p9 }
  0x30   : > { %s803_s9 = sand.u32 (!%p156_p2), 1, %s659_s13  }
  0x31   : > { %159 = sbr.rel (%p156_p2) target bundleno = 491 (0x1eb), region = 32  ;;  %s467_s10 = sshll.u32 (!%p156_p2), %s803_s9, 5 }
  0x32   : > { %s162_s11 = scalar_lea.sflag (!%p156_p2), [#allocation3], %s803_s9  ;;  %s165_s17 = scalar_lea.vmem (!%p156_p2), [#allocation2], %s467_s10 }
  0x38   : > { %646 = dma.done.wait (%p740_p6), %s162_s11, 512  }
  0x39   : > { %648 = vsyncadd (%p740_p6), %s162_s11, 4294966784  ;;  %v673_v0 = vmov 0   ;;  %vm194_vm0 = vcmask 261120   ;;  %v190_v1 = vld [vmem:[%s165_s17] sm:$0xff]  ;;  %v191_v2 = vld [vmem:[%s165_s17 + $0x8] sm:$0xff]  ;;  %v278_v11 = vlaneseq  ;;  %s471_s26 = sshll.u32 %s718_s16, 7 }
  0x3a   : > { %558 = vset.pattern.permute.xlu0 %v673_v0  ;;  %v192_v3 = vld [vmem:[%s165_s17 + $0x10] sm:$0xff]  ;;  %v498_v4 = vpack.c.bf16 %v191_v2, %v190_v1  ;;  %v193_v5 = vld [vmem:[%s165_s17 + $0x18] sm:$0xff]  ;;  %v188_v6 = vld [vmem:[%s913_s0] sm:$0xff]  ;;  %v281_v13 = vstv %s471_s26  ;;  %v674_v27 = vmov 0.0   ;;  %vm675_vm4 = vmmov 1   ;;  %s468_s27 = sshll.u32 %s803_s9, 3  ;;  %s869_s10 = scalar_lea.hbm %s916_s3, %s471_s26 }
  0x3b   : > { %v502_v7 = vpack.c.bf16 %v193_v5, %v192_v3  ;;  %495 = vmatprep.mubr.msk.f32.mxu0 %vm194_vm0, %v188_v6  ;;  %v276_v8 = vld [vmem:[%s914_s1] sm:$0xff]  ;;  %v277_v9 = vld [vmem:[%s914_s1 + $0x8] sm:$0xff]  ;;  %v279_v12 = vand.u32 127, %v278_v11  ;;  %v348_v50 = vshrl.u32 %v278_v11, 7  ;;  %s187_s28 = scalar_lea.vmem [#allocation5], %s468_s27  ;;  %s378_s11 = scalar_lea.sflag [#allocation4], %s803_s9 }
  0x3c   : > { %499 = vmatprep.subr.bf16.mxu0 %v498_v4  ;;  %284 = vperm.xlu0 %558, %v276_v8   ;;  %v189_v10 = vld [vmem:[%s913_s0 + $0x8] sm:$0xff]  ;;  %s391_s29 = sshll.u32 %s187_s28, 4  ;;  %p924_p11 = scmp.ne.s32.totalorder %s920_s24, 0  ;;  %s871_s29 = int_to_ptr.vmem [resolvable:$true] %s391_s29 }
  0x3d   : > { %501 = vmatpush3.bf16.msra.mxu0 %v498_v4  ;;  %v830_v15 = vadd.s32 %v281_v13, %v279_v12  ;;  %vm372_vm10 = vcmp.eq.s32.totalorder %v348_v50, 2  ;;  %vm371_vm11 = vcmp.eq.s32.totalorder %v348_v50, 1  ;;  %vm370_vm13 = vcmp.eq.s32.totalorder %v348_v50, 0  ;;  %s601_s17 = scalar_lea.vmem %s871_s29, 128  ;;  %s676_s4 = smov [#allocation5]  }
  0x3e   : > { %503 = vmatprep.subr.bf16.mxu0 %v502_v7  ;;  %p602_p6 = scmp.ne.s32.totalorder %s871_s29, %s601_s17  ;;  %s605_s16 = sshll.u32 %s676_s4, 4  ;;  %s606_s16 = int_to_ptr.vmem [resolvable:$false] %s605_s16 }
  0x3f   : > { %vm291_vm3 = vcmp.lt.s32.totalorder %v830_v15, 200  ;;  %s607_s6 = scalar_lea.vmem %s606_s16, 256  ;;  %p608_p4 = scmp.lt.s32.totalorder %s871_s29, %s606_s16 }
  0x40   : > { %287 = vperm.xlu0 %558, %v277_v9   ;;  %p603_p12 = pnand %p602_p6, %p924_p11  ;;  %p609_p10 = scmp.lt.s32.totalorder %s607_s6, %s601_s17 }
  0x41   : > { %505 = vmatpush3.bf16.msra.mxu0 %v502_v7 }
  0x42   : > { %p604_p13 = pneg %p603_p12  ;;  %p610_p1 = por %p609_p10, %p608_p4 }
  0x44   : > { %496 = vmatmul.mubr.msk.f32.vlgmr.msra.gmra.mrb[0].mxu0 %vm194_vm0, %v189_v10  ;;  %p611_p3 = pnand %p610_p1, %p604_p13 }
  0xbb   : > { %v828_v14 = vpop.permute.xlu0 %284 }
  0xbc   : > { %vm289_vm1 = vcmp.eq.s32.totalorder %v830_v15, %v828_v14 }
  0xbd   : > { %v474_v28 = vsel %vm289_vm1, 1.0, %v674_v27  ;;  %vm292_vm6 = vmxor %vm289_vm1, %vm675_vm4 }
  0xbe   : > { %vm294_vm8 = vmand %vm291_vm3, %vm292_vm6 }
  0xbf   : > { %v834_v19 = vpop.permute.xlu0 %287 }
  0xc0   : > { %vm290_vm2 = vcmp.eq.s32.totalorder %v830_v15, %v834_v19 }
  0xc1   : > { %v475_v29 = vsel %vm290_vm2, 1.0, %v674_v27  ;;  %vm293_vm5 = vmxor %vm290_vm2, %vm675_vm4 }
  0xc2   : > { %v340_v30 = vadd.f32 %v475_v29, %v474_v28  ;;  %vm295_vm7 = vmand %vm291_vm3, %vm293_vm5 }
  0xc4   : > { %v341_v34 = vrot.slane %v340_v30, 4 }
  0xc6   : > { %v342_v38 = vadd.f32 %v341_v34, %v340_v30 }
  0xc8   : > { %v343_v41 = vrot.slane %v342_v38, 2 }
  0xca   : > { %v344_v44 = vadd.f32 %v343_v41, %v342_v38 }
  0xcc   : > { %v345_v47 = vrot.slane %v344_v44, 1 }
  0xce   : > { %v346_v48 = vadd.f32 %v345_v47, %v344_v44 }
  0xd0   : > { %vm367_vm9 = vcmp.gt.f32.partialorder %v346_v48, 0.0 }
  0xd1   : > { %v476_v54 = vsel %vm367_vm9, 1.0, %v674_v27 }
  0xd2   : > { %v373_v58 = vsel %vm372_vm10, %v476_v54, 0.0 }
 0x117   : > { %v497_v16 = vpop.f32.mrb[0].mxu0 }
 0x118   : > { %v297_v17 = vadd.f32 0.1, %v497_v16  ;;  %v267_v18 = vpop.f32.mrb[1].mxu0  ;;  %v314_v26 = vsel %vm290_vm2, %v497_v16, 0.0 }
 0x119   : > { %v296_v20 = vadd.f32 0.1, %v267_v18  ;;  %v313_v21 = vsel %vm289_vm1, %v267_v18, 0.0 }
 0x11a   : > { %v299_v22 = vmul.f32 32.0, %v297_v17  ;;  %315 = vadd.xlane.f32.xlu1 %v313_v21 }
 0x11b   : > { %v298_v23 = vmul.f32 32.0, %v296_v20 }
 0x11c   : > { %v302_v24 = vmul.f32 1.442695, %v299_v22 }
 0x11d   : > { %v300_v25 = vmul.f32 1.442695, %v298_v23 }
 0x11e   : > { %559 = vpow2.f32 %v302_v24  ;;  %317 = vadd.xlane.f32.xlu1 %v314_v26 }
 0x11f   : > { %561 = vpow2.f32 %v300_v25 }
 0x128   : > { %v560_v31 = vpop.eup %559 }
 0x129   : > { %v562_v32 = vpop.eup %561  ;;  %v305_v33 = vsel %vm295_vm7, %v560_v31, 0.0 }
 0x12a   : > { %v304_v35 = vsel %vm294_vm8, %v562_v32, 0.0 }
 0x12b   : > { %v306_v36 = vadd.f32 %v305_v33, %v304_v35 }
 0x12d   : > { %v307_v37 = vrot.slane %v306_v36, 4 }
 0x12f   : > { %v308_v39 = vadd.f32 %v307_v37, %v306_v36 }
 0x131   : > { %v309_v40 = vrot.slane %v308_v39, 2 }
 0x133   : > { %v310_v42 = vadd.f32 %v309_v40, %v308_v39 }
 0x135   : > { %v311_v43 = vrot.slane %v310_v42, 1 }
 0x137   : > { %v312_v45 = vadd.f32 %v311_v43, %v310_v42 }
 0x139   : > { %v358_v46 = vadd.f32 1.0, %v312_v45  ;;  %v361_v49 = vmul.f32 -0.5, %v312_v45  ;;  %v364_v52 = vand.u32 2147483647, %v312_v45 }
 0x13b   : > { %563 = vlog2.f32 %v358_v46  ;;  %v362_v51 = vadd.f32 1.0, %v361_v49  ;;  %vm365_vm12 = vcmp.lt.f32.partialorder %v364_v52, 0.0004427343 }
 0x13d   : > { %v363_v56 = vmul.f32 %v362_v51, %v312_v45 }
 0x145   : > { %v564_v53 = vpop.eup %563 }
 0x146   : > { %v360_v55 = vmul.f32 0.6931472, %v564_v53 }
 0x148   : > { %v366_v57 = vsel %vm365_vm12, %v363_v56, %v360_v55 }
 0x149   : > { %v374_v59 = vsel %vm371_vm11, %v366_v57, %v373_v58 }
 0x1a7   : > { %v316_v60 = vpop.xlane.xlu1 %315 }
 0x1a8   : > { %v472_v61 = vadd.f32 -0.1, %v316_v60 }
 0x1aa   : > { %v321_v62 = vmul.f32 -32.0, %v472_v61 }
 0x1ab   : > { %v318_v63 = vpop.xlane.xlu1 %317 }
 0x1ac   : > { %v323_v0 = vmul.f32 1.442695, %v321_v62  ;;  %v473_v1 = vadd.f32 -0.1, %v318_v63 }
 0x1ae   : > { %v322_v2 = vmul.f32 -32.0, %v473_v1  ;;  %565 = vpow2.f32 %v323_v0 }
 0x1b0   : > { %v325_v3 = vmul.f32 1.442695, %v322_v2 }
 0x1b2   : > { %567 = vpow2.f32 %v325_v3 }
 0x1b8   : > { %v566_v4 = vpop.eup %565 }
 0x1b9   : > { %v327_v6 = vsel %vm289_vm1, %v566_v4, 0.0 }
 0x1bc   : > { %v568_v5 = vpop.eup %567 }
 0x1bd   : > { %v328_v7 = vsel %vm290_vm2, %v568_v5, 0.0 }
 0x1be   : > { %v329_v8 = vadd.f32 %v328_v7, %v327_v6 }
 0x1c0   : > { %v330_v9 = vrot.slane %v329_v8, 4 }
 0x1c2   : > { %v331_v10 = vadd.f32 %v330_v9, %v329_v8 }
 0x1c4   : > { %v332_v11 = vrot.slane %v331_v10, 2 }
 0x1c6   : > { %v333_v12 = vadd.f32 %v332_v11, %v331_v10 }
 0x1c8   : > { %v334_v13 = vrot.slane %v333_v12, 1 }
 0x1ca   : > { %v335_v16 = vadd.f32 %v334_v13, %v333_v12 }
 0x1cc   : > { %v349_v17 = vadd.f32 1.0, %v335_v16  ;;  %v352_v18 = vmul.f32 -0.5, %v335_v16  ;;  %v355_v14 = vand.u32 2147483647, %v335_v16 }
 0x1ce   : > { %569 = vlog2.f32 %v349_v17  ;;  %v353_v20 = vadd.f32 1.0, %v352_v18  ;;  %vm356_vm14 = vcmp.lt.f32.partialorder %v355_v14, 0.0004427343 }
 0x1d0   : > { %v354_v19 = vmul.f32 %v353_v20, %v335_v16 }
 0x1d8   : > { %v570_v21 = vpop.eup %569 }
 0x1d9   : > { %v351_v15 = vmul.f32 0.6931472, %v570_v21 }
 0x1db   : > { %v357_v22 = vsel %vm356_vm14, %v354_v19, %v351_v15 }
 0x1dc   : > { %v375_v23 = vsel %vm370_vm13, %v357_v22, %v374_v59 }
 0x1dd   : > { %376 = vst [vmem:[%s187_s28] sm:$0xff] %v375_v23 }
 0x1de   : > { %614 = shalt.err (!%p611_p3)
}
 0x1df   : > { %s615_s9 = scalar_lea.hbm %s869_s10, 128  ;;  %s619_s8 = scalar_lea.hbm %s916_s3, 256 }
 0x1e0   : > { %p616_p5 = scmp.ne.s32.totalorder %s869_s10, %s615_s9  ;;  %p620_p9 = scmp.lt.u32.totalorder %s869_s10, %s916_s3 }
 0x1e1   : > { %p621_p0 = scmp.lt.u32.totalorder %s619_s8, %s615_s9  ;;  %p623_p6 = scmp.lt.u32.totalorder %s615_s9, %s869_s10 }
 0x1e2   : > { %p617_p7 = pnand %p616_p5, %p924_p11 }
 0x1e3   : > { %p622_p2 = por %p621_p0, %p620_p9 }
 0x1e4   : > { %p618_p8 = pneg %p617_p7 }
 0x1e5   : > { %p624_p12 = por %p623_p6, %p622_p2 }
 0x1e7   : > { %p625_p13 = pnand %p624_p12, %p618_p8 }
 0x1e9   : > { %628 = shalt.err (!%p625_p13)
}
 0x1ea   : > { %508 = dma.vmem_to_hbm [thread:$0]  (%p924_p11), %s871_s29, 128, %s869_s10, %s378_s11  }
 0x1eb PF: > { %s403_s22 = sand.u32 1, %s655_s12   ;;  %p925_p4 = scmp.ne.s32.totalorder %s921_s25, 0 }
 0x1ec   : > { %p926_p10 = scmp.ge.s32.totalorder %s667_s15, 2  ;;  %s404_s26 = scalar_lea.sflag [#allocation4], %s403_s22 }
 0x1ee   : > { %p515_p1 = pnand %p926_p10, %p925_p4 }
 0x1f0   : > { %650 = dma.done.wait (!%p515_p1), %s404_s26, 128  }
 0x1f1   : > { %652 = vsyncadd (!%p515_p1), %s404_s26, 4294967168  ;;  %p16_p3 = scmp.ge.s32.totalorder %s722_s18, 4   ;;  %s927_s12 = smov %s659_s13 }
 0x1f2   : > { %s928_s13 = smov %s663_s14  ;;  %s929_s14 = smov %s734_s21 }
 0x1f3   : > { %s930_s15 = smov %s722_s18  ;;  %18 = sbr.rel (!%p16_p3) target bundleno = 5 (0x5), region = 77 }
 0x1fa   :  { %409 = vsyncpa [#allocation3], 1 }
 0x1fb   :  { %411 = vsyncpa [#allocation3 + $0x1], 1 }
 0x1fc   :  { %412 = vsyncpa [#allocation4], 1 }
 0x1fd   :  { %414 = vsyncpa [#allocation4 + $0x1], 1 }

</bundles_post_ra>
